<compile_context>
chip_gen: v5e
topology: v5e:2x2
jax: 0.10.0
libtpu: 0.0.40
codegen_flags: <defaults>
</compile_context>

<pallas_src>
import functools

import jax
import jax.numpy as jnp
from jax.experimental import pallas as pl
from jax.experimental.pallas import tpu as pltpu


def _encoder_kernel(*refs, num_layers):
    """Fused gated-MLP encoder + GaussianSample head on VMEM-resident tiles.

    refs layout (all inputs first, then outputs):
      inputs : x,
               [W_i, b_i, Wg_eff_i, bg_eff_i] * num_layers,
               Wmu, bmu, Wlv, blv, eps
      outputs: z_sample, mu, log_var, z_hidden
    """
    n_in = 1 + 4 * num_layers + 4 + 1
    in_refs = refs[:n_in]
    zs_ref, mu_ref, lv_ref, zh_ref = refs[n_in:]

    x = in_refs[0][...].astype(jnp.float32)          # (tile_b, d_in)

    idx = 1
    for _ in range(num_layers):
        w_ref, b_ref, wg_ref, bg_ref = in_refs[idx:idx + 4]
        idx += 4
        # x_pre = Linear(x)
        x_pre = jnp.dot(x, w_ref[...], preferred_element_type=jnp.float32) + b_ref[...]
        # g = relu(BatchNorm(gate_linear(x)))  -- BN (inference) folded into wg/bg
        g = jnp.dot(x, wg_ref[...], preferred_element_type=jnp.float32) + bg_ref[...]
        g = jnp.maximum(g, 0.0)
        # Gate(h, g) = h * g
        x = x_pre * g
        # TODO(synk): F.dropout(x) in the PyTorch code defaults to training=True;
        # implemented here as inference-mode identity (no stochastic mask).

    wmu_ref, bmu_ref, wlv_ref, blv_ref, eps_ref = in_refs[idx:idx + 5]

    mu = jnp.dot(x, wmu_ref[...], preferred_element_type=jnp.float32) + bmu_ref[...]
    lv_lin = jnp.dot(x, wlv_ref[...], preferred_element_type=jnp.float32) + blv_ref[...]
    # numerically stable softplus
    log_var = jnp.log(1.0 + jnp.exp(-jnp.abs(lv_lin))) + jnp.maximum(lv_lin, 0.0)
    std = jnp.exp(0.5 * log_var)
    z_sample = mu + std * eps_ref[...]

    zs_ref[...] = z_sample.astype(zs_ref.dtype)
    mu_ref[...] = mu.astype(mu_ref.dtype)
    lv_ref[...] = log_var.astype(lv_ref.dtype)
    zh_ref[...] = x.astype(zh_ref.dtype)


def _full_2d_spec(arr):
    # weights / biases: whole array resident in VMEM, same block for every
    # grid step (the pipeline keeps them loaded).
    return pl.BlockSpec(arr.shape, lambda i: (0, 0))


def encoder_forward(x_cat, eps, layer_params, sample_params, *, tile_b=None):
    """Single fused pallas_call for the whole Encoder forward.

    x_cat        : (B, d_in) already-concatenated [x, y, a]
    eps          : (B, z_dim) reparameterization noise
    layer_params : list of (W, b2, Wg_eff, bg_eff), each W (in, out), b (1, out)
    sample_params: (Wmu, bmu2, Wlv, blv2)
    returns (z_sample, mu, log_var, z_hidden)
    """
    B, d_in = x_cat.shape
    num_layers = len(layer_params)
    h_last = layer_params[-1][0].shape[1]
    z_dim = sample_params[0].shape[1]

    if tile_b is None:
        tile_b = min(B, 128)
    assert B % tile_b == 0 and tile_b % 8 == 0, "batch tile must be a multiple of 8"

    inputs = [x_cat]
    in_specs = [pl.BlockSpec((tile_b, d_in), lambda i: (i, 0))]
    for params in layer_params:
        for arr in params:
            inputs.append(arr)
            in_specs.append(_full_2d_spec(arr))
    for arr in sample_params:
        inputs.append(arr)
        in_specs.append(_full_2d_spec(arr))
    inputs.append(eps)
    in_specs.append(pl.BlockSpec((tile_b, z_dim), lambda i: (i, 0)))

    out_shape = (
        jax.ShapeDtypeStruct((B, z_dim), jnp.float32),   # z_sample
        jax.ShapeDtypeStruct((B, z_dim), jnp.float32),   # mu
        jax.ShapeDtypeStruct((B, z_dim), jnp.float32),   # log_var
        jax.ShapeDtypeStruct((B, h_last), jnp.float32),  # z (final hidden)
    )
    out_specs = (
        pl.BlockSpec((tile_b, z_dim), lambda i: (i, 0)),
        pl.BlockSpec((tile_b, z_dim), lambda i: (i, 0)),
        pl.BlockSpec((tile_b, z_dim), lambda i: (i, 0)),
        pl.BlockSpec((tile_b, h_last), lambda i: (i, 0)),
    )

    kernel = functools.partial(_encoder_kernel, num_layers=num_layers)
    return pl.pallas_call(
        kernel,
        out_shape=out_shape,
        grid=(B // tile_b,),
        in_specs=in_specs,
        out_specs=out_specs,
        compiler_params=pltpu.CompilerParams(
            dimension_semantics=("parallel",)
        ),
    )(*inputs)


class EncoderPallas:
    """JAX/Pallas port of the PyTorch VAE `Encoder` (gated MLP + GaussianSample)."""

    BN_EPS = 1e-5

    def __init__(self, input_size, h_dim, z_dim, y_dim=0, a_dim=0, *, key):
        self.input_size = input_size
        self.h_dim = list(h_dim)
        self.z_dim = z_dim
        self.y_dim = y_dim
        self.a_dim = a_dim

        neurons = [input_size + y_dim + a_dim, *h_dim]

        def lin_init(k, din, dout):
            kw, kb = jax.random.split(k)
            bound = 1.0 / float(din) ** 0.5
            # weight stored PRE-TRANSPOSED as (in, out) so the kernel does x @ W
            w = jax.random.uniform(kw, (din, dout), jnp.float32, -bound, bound)
            b = jax.random.uniform(kb, (dout,), jnp.float32, -bound, bound)
            return w, b

        # raw (unfolded) params, used by the pure-JAX reference
        self.raw_layers = []
        # kernel-ready params (bias as (1, out), BN folded into the gate)
        self.kernel_layers = []

        for din, dout in zip(neurons[:-1], neurons[1:]):
            key, k1, k2, k3 = jax.random.split(key, 4)
            w, b = lin_init(k1, din, dout)
            wg, bg = lin_init(k2, din, dout)
            # BatchNorm1d params (randomized so the test is meaningful);
            # applied in inference mode with running statistics.
            kg, kb2, km, kv = jax.random.split(k3, 4)
            gamma = 1.0 + 0.1 * jax.random.normal(kg, (dout,), jnp.float32)
            beta = 0.1 * jax.random.normal(kb2, (dout,), jnp.float32)
            r_mean = 0.1 * jax.random.normal(km, (dout,), jnp.float32)
            r_var = jnp.abs(1.0 + 0.1 * jax.random.normal(kv, (dout,), jnp.float32))

            self.raw_layers.append((w, b, wg, bg, gamma, beta, r_mean, r_var))

            # fold inference-mode BN into the gate linear:
            #   bn(u) = (u - mean)/sqrt(var+eps)*gamma + beta = u*scale + shift
            scale = gamma / jnp.sqrt(r_var + self.BN_EPS)
            shift = beta - r_mean * scale
            wg_eff = wg * scale[None, :]
            bg_eff = (bg * scale + shift).reshape(1, dout)
            self.kernel_layers.append((w, b.reshape(1, dout), wg_eff, bg_eff))

        # GaussianSample head: mu = Linear(x), log_var = softplus(Linear(x))
        key, k_mu, k_lv = jax.random.split(key, 3)
        wmu, bmu = lin_init(k_mu, neurons[-1], z_dim)
        wlv, blv = lin_init(k_lv, neurons[-1], z_dim)
        self.raw_sample = (wmu, bmu, wlv, blv)
        self.kernel_sample = (wmu, bmu.reshape(1, z_dim), wlv, blv.reshape(1, z_dim))

    def __call__(self, x, y=None, a=None, eps=None, input_shape=None):
        if input_shape is not None:
            x = x.reshape(x.shape[0], -1).astype(jnp.float32)
        B = x.shape[0]
        if y is None:
            y = jnp.zeros((B, 0), jnp.float32)
        if a is None:
            a = jnp.zeros((B, 0), jnp.float32)
        x_cat = jnp.concatenate([x, y, a], axis=1)
        if eps is None:
            eps = jnp.zeros((B, self.z_dim), jnp.float32)
        z_s, mu, log_var, z = encoder_forward(
            x_cat, eps, self.kernel_layers, self.kernel_sample
        )
        return (z_s, mu, log_var), z


def encoder_ref(x, y, a, eps, raw_layers, raw_sample, bn_eps=1e-5):
    """Pure-JAX reference (unfolded BN, explicit softplus/reparameterize)."""
    x = jnp.concatenate([x, y, a], axis=1)
    for (w, b, wg, bg, gamma, beta, r_mean, r_var) in raw_layers:
        x_pre = jnp.dot(x, w, precision=jax.lax.Precision.HIGHEST) + b
        g = jnp.dot(x, wg, precision=jax.lax.Precision.HIGHEST) + bg
        g = (g - r_mean) / jnp.sqrt(r_var + bn_eps) * gamma + beta
        g = jnp.maximum(g, 0.0)
        x = x_pre * g
    wmu, bmu, wlv, blv = raw_sample
    mu = jnp.dot(x, wmu, precision=jax.lax.Precision.HIGHEST) + bmu
    lv_lin = jnp.dot(x, wlv, precision=jax.lax.Precision.HIGHEST) + blv
    log_var = jnp.log(1.0 + jnp.exp(-jnp.abs(lv_lin))) + jnp.maximum(lv_lin, 0.0)
    z_s = mu + jnp.exp(0.5 * log_var) * eps
    return (z_s, mu, log_var), x


if __name__ == "__main__":
    key = jax.random.PRNGKey(0)
    key, kx, ky, keps, kp = jax.random.split(key, 5)

    batch = 8
    input_size = 32
    y_dim = 8
    a_dim = 0
    h_dim = [64, 48]
    z_dim = 16

    x = jax.random.normal(kx, (batch, input_size), jnp.float32)
    y = jax.random.normal(ky, (batch, y_dim), jnp.float32)
    a = jnp.zeros((batch, a_dim), jnp.float32)
    eps = jax.random.normal(keps, (batch, z_dim), jnp.float32)

    model = EncoderPallas(input_size, h_dim, z_dim, y_dim=y_dim, a_dim=a_dim, key=kp)

    (z_s, mu, log_var), z = model(x, y=y, a=a, eps=eps)
    z_s, mu, log_var, z = jax.block_until_ready((z_s, mu, log_var, z))

    (z_s_ref, mu_ref, lv_ref), z_ref = encoder_ref(
        x, y, a, eps, model.raw_layers, model.raw_sample
    )

    assert z.shape == (batch, h_dim[-1])
    assert z_s.shape == (batch, z_dim)
    for got, want, name in (
        (z, z_ref, "z"),
        (mu, mu_ref, "mu"),
        (log_var, lv_ref, "log_var"),
        (z_s, z_s_ref, "z_sample"),
    ):
        assert jnp.allclose(got, want, atol=1e-3, rtol=1e-3), f"mismatch in {name}"

    print("KERNEL_OK")
</pallas_src>

<mosaic_0001>
module attributes {stable_mosaic.version = 11 : i64} {
  func.func @_encoder_kernel(%arg0: i32, %arg1: memref<8x40xf32, #tpu.memory_space<vmem>>, %arg2: memref<40x64xf32, #tpu.memory_space<vmem>>, %arg3: memref<1x64xf32, #tpu.memory_space<vmem>>, %arg4: memref<40x64xf32, #tpu.memory_space<vmem>>, %arg5: memref<1x64xf32, #tpu.memory_space<vmem>>, %arg6: memref<64x48xf32, #tpu.memory_space<vmem>>, %arg7: memref<1x48xf32, #tpu.memory_space<vmem>>, %arg8: memref<64x48xf32, #tpu.memory_space<vmem>>, %arg9: memref<1x48xf32, #tpu.memory_space<vmem>>, %arg10: memref<48x16xf32, #tpu.memory_space<vmem>>, %arg11: memref<1x16xf32, #tpu.memory_space<vmem>>, %arg12: memref<48x16xf32, #tpu.memory_space<vmem>>, %arg13: memref<1x16xf32, #tpu.memory_space<vmem>>, %arg14: memref<8x16xf32, #tpu.memory_space<vmem>>, %arg15: memref<8x16xf32, #tpu.memory_space<vmem>>, %arg16: memref<8x16xf32, #tpu.memory_space<vmem>>, %arg17: memref<8x16xf32, #tpu.memory_space<vmem>>, %arg18: memref<8x48xf32, #tpu.memory_space<vmem>>) attributes {dimension_semantics = [#tpu.dimension_semantics<parallel>], iteration_bounds = array<i64: 1>, scalar_prefetch = 0 : i64, scratch_operands = 0 : i64, tpu.core_type = #tpu.core_type<tc>, window_params = [{transform_indices = @transform_0, window_bounds = array<i64: 8, 40>}, {pipeline_mode = #tpu.pipeline_mode<synchronous>, transform_indices = @transform_1, window_bounds = array<i64: 40, 64>}, {pipeline_mode = #tpu.pipeline_mode<synchronous>, transform_indices = @transform_2, window_bounds = array<i64: 1, 64>}, {pipeline_mode = #tpu.pipeline_mode<synchronous>, transform_indices = @transform_3, window_bounds = array<i64: 40, 64>}, {pipeline_mode = #tpu.pipeline_mode<synchronous>, transform_indices = @transform_4, window_bounds = array<i64: 1, 64>}, {pipeline_mode = #tpu.pipeline_mode<synchronous>, transform_indices = @transform_5, window_bounds = array<i64: 64, 48>}, {pipeline_mode = #tpu.pipeline_mode<synchronous>, transform_indices = @transform_6, window_bounds = array<i64: 1, 48>}, {pipeline_mode = #tpu.pipeline_mode<synchronous>, transform_indices = @transform_7, window_bounds = array<i64: 64, 48>}, {pipeline_mode = #tpu.pipeline_mode<synchronous>, transform_indices = @transform_8, window_bounds = array<i64: 1, 48>}, {pipeline_mode = #tpu.pipeline_mode<synchronous>, transform_indices = @transform_9, window_bounds = array<i64: 48, 16>}, {pipeline_mode = #tpu.pipeline_mode<synchronous>, transform_indices = @transform_10, window_bounds = array<i64: 1, 16>}, {pipeline_mode = #tpu.pipeline_mode<synchronous>, transform_indices = @transform_11, window_bounds = array<i64: 48, 16>}, {pipeline_mode = #tpu.pipeline_mode<synchronous>, transform_indices = @transform_12, window_bounds = array<i64: 1, 16>}, {transform_indices = @transform_13, window_bounds = array<i64: 8, 16>}, {transform_indices = @transform_14, window_bounds = array<i64: 8, 16>}, {transform_indices = @transform_15, window_bounds = array<i64: 8, 16>}, {transform_indices = @transform_16, window_bounds = array<i64: 8, 16>}, {transform_indices = @transform_17, window_bounds = array<i64: 8, 48>}]} {
    %c0 = arith.constant 0 : index
    %c0_0 = arith.constant 0 : index
    %0 = vector.load %arg1[%c0, %c0_0] : memref<8x40xf32, #tpu.memory_space<vmem>>, vector<8x40xf32>
    %c0_1 = arith.constant 0 : index
    %c0_2 = arith.constant 0 : index
    %1 = vector.load %arg2[%c0_1, %c0_2] : memref<40x64xf32, #tpu.memory_space<vmem>>, vector<40x64xf32>
    %cst = arith.constant dense<0.000000e+00> : vector<8x64xf32>
    %2 = tpu.matmul %0, %1, %cst {dimension_numbers = #tpu.dot_dimension_numbers<[1], [0], [0], [1], [0, 0, 1, 1], [], []>} : vector<8x40xf32>, vector<40x64xf32>, vector<8x64xf32> -> vector<8x64xf32>
    %c0_3 = arith.constant 0 : index
    %c0_4 = arith.constant 0 : index
    %3 = vector.load %arg3[%c0_3, %c0_4] : memref<1x64xf32, #tpu.memory_space<vmem>>, vector<1x64xf32>
    %4 = vector.broadcast %3 : vector<1x64xf32> to vector<8x64xf32>
    %5 = arith.addf %2, %4 : vector<8x64xf32>
    %c0_5 = arith.constant 0 : index
    %c0_6 = arith.constant 0 : index
    %6 = vector.load %arg4[%c0_5, %c0_6] : memref<40x64xf32, #tpu.memory_space<vmem>>, vector<40x64xf32>
    %cst_7 = arith.constant dense<0.000000e+00> : vector<8x64xf32>
    %7 = tpu.matmul %0, %6, %cst_7 {dimension_numbers = #tpu.dot_dimension_numbers<[1], [0], [0], [1], [0, 0, 1, 1], [], []>} : vector<8x40xf32>, vector<40x64xf32>, vector<8x64xf32> -> vector<8x64xf32>
    %c0_8 = arith.constant 0 : index
    %c0_9 = arith.constant 0 : index
    %8 = vector.load %arg5[%c0_8, %c0_9] : memref<1x64xf32, #tpu.memory_space<vmem>>, vector<1x64xf32>
    %9 = vector.broadcast %8 : vector<1x64xf32> to vector<8x64xf32>
    %10 = arith.addf %7, %9 : vector<8x64xf32>
    %cst_10 = arith.constant 0.000000e+00 : f32
    %11 = vector.broadcast %cst_10 : f32 to vector<8x64xf32>
    %12 = arith.maximumf %10, %11 : vector<8x64xf32>
    %13 = arith.mulf %5, %12 : vector<8x64xf32>
    %c0_11 = arith.constant 0 : index
    %c0_12 = arith.constant 0 : index
    %14 = vector.load %arg6[%c0_11, %c0_12] : memref<64x48xf32, #tpu.memory_space<vmem>>, vector<64x48xf32>
    %cst_13 = arith.constant dense<0.000000e+00> : vector<8x48xf32>
    %15 = tpu.matmul %13, %14, %cst_13 {dimension_numbers = #tpu.dot_dimension_numbers<[1], [0], [0], [1], [0, 0, 1, 1], [], []>} : vector<8x64xf32>, vector<64x48xf32>, vector<8x48xf32> -> vector<8x48xf32>
    %c0_14 = arith.constant 0 : index
    %c0_15 = arith.constant 0 : index
    %16 = vector.load %arg7[%c0_14, %c0_15] : memref<1x48xf32, #tpu.memory_space<vmem>>, vector<1x48xf32>
    %17 = vector.broadcast %16 : vector<1x48xf32> to vector<8x48xf32>
    %18 = arith.addf %15, %17 : vector<8x48xf32>
    %c0_16 = arith.constant 0 : index
    %c0_17 = arith.constant 0 : index
    %19 = vector.load %arg8[%c0_16, %c0_17] : memref<64x48xf32, #tpu.memory_space<vmem>>, vector<64x48xf32>
    %cst_18 = arith.constant dense<0.000000e+00> : vector<8x48xf32>
    %20 = tpu.matmul %13, %19, %cst_18 {dimension_numbers = #tpu.dot_dimension_numbers<[1], [0], [0], [1], [0, 0, 1, 1], [], []>} : vector<8x64xf32>, vector<64x48xf32>, vector<8x48xf32> -> vector<8x48xf32>
    %c0_19 = arith.constant 0 : index
    %c0_20 = arith.constant 0 : index
    %21 = vector.load %arg9[%c0_19, %c0_20] : memref<1x48xf32, #tpu.memory_space<vmem>>, vector<1x48xf32>
    %22 = vector.broadcast %21 : vector<1x48xf32> to vector<8x48xf32>
    %23 = arith.addf %20, %22 : vector<8x48xf32>
    %cst_21 = arith.constant 0.000000e+00 : f32
    %24 = vector.broadcast %cst_21 : f32 to vector<8x48xf32>
    %25 = arith.maximumf %23, %24 : vector<8x48xf32>
    %26 = arith.mulf %18, %25 : vector<8x48xf32>
    %c0_22 = arith.constant 0 : index
    %c0_23 = arith.constant 0 : index
    %27 = vector.load %arg10[%c0_22, %c0_23] : memref<48x16xf32, #tpu.memory_space<vmem>>, vector<48x16xf32>
    %cst_24 = arith.constant dense<0.000000e+00> : vector<8x16xf32>
    %28 = tpu.matmul %26, %27, %cst_24 {dimension_numbers = #tpu.dot_dimension_numbers<[1], [0], [0], [1], [0, 0, 1, 1], [], []>} : vector<8x48xf32>, vector<48x16xf32>, vector<8x16xf32> -> vector<8x16xf32>
    %c0_25 = arith.constant 0 : index
    %c0_26 = arith.constant 0 : index
    %29 = vector.load %arg11[%c0_25, %c0_26] : memref<1x16xf32, #tpu.memory_space<vmem>>, vector<1x16xf32>
    %30 = vector.broadcast %29 : vector<1x16xf32> to vector<8x16xf32>
    %31 = arith.addf %28, %30 : vector<8x16xf32>
    %c0_27 = arith.constant 0 : index
    %c0_28 = arith.constant 0 : index
    %32 = vector.load %arg12[%c0_27, %c0_28] : memref<48x16xf32, #tpu.memory_space<vmem>>, vector<48x16xf32>
    %cst_29 = arith.constant dense<0.000000e+00> : vector<8x16xf32>
    %33 = tpu.matmul %26, %32, %cst_29 {dimension_numbers = #tpu.dot_dimension_numbers<[1], [0], [0], [1], [0, 0, 1, 1], [], []>} : vector<8x48xf32>, vector<48x16xf32>, vector<8x16xf32> -> vector<8x16xf32>
    %c0_30 = arith.constant 0 : index
    %c0_31 = arith.constant 0 : index
    %34 = vector.load %arg13[%c0_30, %c0_31] : memref<1x16xf32, #tpu.memory_space<vmem>>, vector<1x16xf32>
    %35 = vector.broadcast %34 : vector<1x16xf32> to vector<8x16xf32>
    %36 = arith.addf %33, %35 : vector<8x16xf32>
    %37 = math.absf %36 : vector<8x16xf32>
    %cst_32 = arith.constant 0.000000e+00 : f32
    %38 = vector.broadcast %cst_32 : f32 to vector<8x16xf32>
    %39 = arith.subf %38, %37 : vector<8x16xf32>
    %40 = math.exp %39 : vector<8x16xf32>
    %cst_33 = arith.constant 1.000000e+00 : f32
    %41 = vector.broadcast %cst_33 : f32 to vector<8x16xf32>
    %42 = arith.addf %41, %40 : vector<8x16xf32>
    %43 = math.log %42 : vector<8x16xf32>
    %cst_34 = arith.constant 0.000000e+00 : f32
    %44 = vector.broadcast %cst_34 : f32 to vector<8x16xf32>
    %45 = arith.maximumf %36, %44 : vector<8x16xf32>
    %46 = arith.addf %43, %45 : vector<8x16xf32>
    %cst_35 = arith.constant 5.000000e-01 : f32
    %47 = vector.broadcast %cst_35 : f32 to vector<8x16xf32>
    %48 = arith.mulf %47, %46 : vector<8x16xf32>
    %49 = math.exp %48 : vector<8x16xf32>
    %c0_36 = arith.constant 0 : index
    %c0_37 = arith.constant 0 : index
    %50 = vector.load %arg14[%c0_36, %c0_37] : memref<8x16xf32, #tpu.memory_space<vmem>>, vector<8x16xf32>
    %51 = arith.mulf %49, %50 : vector<8x16xf32>
    %52 = arith.addf %31, %51 : vector<8x16xf32>
    %c0_38 = arith.constant 0 : index
    %c0_39 = arith.constant 0 : index
    %53 = vector.load %arg15[%c0_38, %c0_39] : memref<8x16xf32, #tpu.memory_space<vmem>>, vector<8x16xf32>
    tpu.vector_store %arg15[%c0_38, %c0_39], %52 {strides = array<i32>} : memref<8x16xf32, #tpu.memory_space<vmem>>, vector<8x16xf32>,
    %c0_40 = arith.constant 0 : index
    %c0_41 = arith.constant 0 : index
    %54 = vector.load %arg16[%c0_40, %c0_41] : memref<8x16xf32, #tpu.memory_space<vmem>>, vector<8x16xf32>
    tpu.vector_store %arg16[%c0_40, %c0_41], %31 {strides = array<i32>} : memref<8x16xf32, #tpu.memory_space<vmem>>, vector<8x16xf32>,
    %c0_42 = arith.constant 0 : index
    %c0_43 = arith.constant 0 : index
    %55 = vector.load %arg17[%c0_42, %c0_43] : memref<8x16xf32, #tpu.memory_space<vmem>>, vector<8x16xf32>
    tpu.vector_store %arg17[%c0_42, %c0_43], %46 {strides = array<i32>} : memref<8x16xf32, #tpu.memory_space<vmem>>, vector<8x16xf32>,
    %c0_44 = arith.constant 0 : index
    %c0_45 = arith.constant 0 : index
    %56 = vector.load %arg18[%c0_44, %c0_45] : memref<8x48xf32, #tpu.memory_space<vmem>>, vector<8x48xf32>
    tpu.vector_store %arg18[%c0_44, %c0_45], %26 {strides = array<i32>} : memref<8x48xf32, #tpu.memory_space<vmem>>, vector<8x48xf32>,
    return
  }
  func.func @transform_0(%arg0: i32) -> (i32, i32) {
    %c0_i32 = arith.constant 0 : i32
    %c0_i32_0 = arith.constant 0 : i32
    return %arg0, %c0_i32 : i32, i32
  }
  func.func @transform_1(%arg0: i32) -> (i32, i32) {
    %c0_i32 = arith.constant 0 : i32
    %c0_i32_0 = arith.constant 0 : i32
    %c0_i32_1 = arith.constant 0 : i32
    return %c0_i32, %c0_i32_0 : i32, i32
  }
  func.func @transform_2(%arg0: i32) -> (i32, i32) {
    %c0_i32 = arith.constant 0 : i32
    %c0_i32_0 = arith.constant 0 : i32
    %c0_i32_1 = arith.constant 0 : i32
    return %c0_i32, %c0_i32_0 : i32, i32
  }
  func.func @transform_3(%arg0: i32) -> (i32, i32) {
    %c0_i32 = arith.constant 0 : i32
    %c0_i32_0 = arith.constant 0 : i32
    %c0_i32_1 = arith.constant 0 : i32
    return %c0_i32, %c0_i32_0 : i32, i32
  }
  func.func @transform_4(%arg0: i32) -> (i32, i32) {
    %c0_i32 = arith.constant 0 : i32
    %c0_i32_0 = arith.constant 0 : i32
    %c0_i32_1 = arith.constant 0 : i32
    return %c0_i32, %c0_i32_0 : i32, i32
  }
  func.func @transform_5(%arg0: i32) -> (i32, i32) {
    %c0_i32 = arith.constant 0 : i32
    %c0_i32_0 = arith.constant 0 : i32
    %c0_i32_1 = arith.constant 0 : i32
    return %c0_i32, %c0_i32_0 : i32, i32
  }
  func.func @transform_6(%arg0: i32) -> (i32, i32) {
    %c0_i32 = arith.constant 0 : i32
    %c0_i32_0 = arith.constant 0 : i32
    %c0_i32_1 = arith.constant 0 : i32
    return %c0_i32, %c0_i32_0 : i32, i32
  }
  func.func @transform_7(%arg0: i32) -> (i32, i32) {
    %c0_i32 = arith.constant 0 : i32
    %c0_i32_0 = arith.constant 0 : i32
    %c0_i32_1 = arith.constant 0 : i32
    return %c0_i32, %c0_i32_0 : i32, i32
  }
  func.func @transform_8(%arg0: i32) -> (i32, i32) {
    %c0_i32 = arith.constant 0 : i32
    %c0_i32_0 = arith.constant 0 : i32
    %c0_i32_1 = arith.constant 0 : i32
    return %c0_i32, %c0_i32_0 : i32, i32
  }
  func.func @transform_9(%arg0: i32) -> (i32, i32) {
    %c0_i32 = arith.constant 0 : i32
    %c0_i32_0 = arith.constant 0 : i32
    %c0_i32_1 = arith.constant 0 : i32
    return %c0_i32, %c0_i32_0 : i32, i32
  }
  func.func @transform_10(%arg0: i32) -> (i32, i32) {
    %c0_i32 = arith.constant 0 : i32
    %c0_i32_0 = arith.constant 0 : i32
    %c0_i32_1 = arith.constant 0 : i32
    return %c0_i32, %c0_i32_0 : i32, i32
  }
  func.func @transform_11(%arg0: i32) -> (i32, i32) {
    %c0_i32 = arith.constant 0 : i32
    %c0_i32_0 = arith.constant 0 : i32
    %c0_i32_1 = arith.constant 0 : i32
    return %c0_i32, %c0_i32_0 : i32, i32
  }
  func.func @transform_12(%arg0: i32) -> (i32, i32) {
    %c0_i32 = arith.constant 0 : i32
    %c0_i32_0 = arith.constant 0 : i32
    %c0_i32_1 = arith.constant 0 : i32
    return %c0_i32, %c0_i32_0 : i32, i32
  }
  func.func @transform_13(%arg0: i32) -> (i32, i32) {
    %c0_i32 = arith.constant 0 : i32
    %c0_i32_0 = arith.constant 0 : i32
    return %arg0, %c0_i32 : i32, i32
  }
  func.func @transform_14(%arg0: i32) -> (i32, i32) {
    %c0_i32 = arith.constant 0 : i32
    %c0_i32_0 = arith.constant 0 : i32
    return %arg0, %c0_i32 : i32, i32
  }
  func.func @transform_15(%arg0: i32) -> (i32, i32) {
    %c0_i32 = arith.constant 0 : i32
    %c0_i32_0 = arith.constant 0 : i32
    return %arg0, %c0_i32 : i32, i32
  }
  func.func @transform_16(%arg0: i32) -> (i32, i32) {
    %c0_i32 = arith.constant 0 : i32
    %c0_i32_0 = arith.constant 0 : i32
    return %arg0, %c0_i32 : i32, i32
  }
  func.func @transform_17(%arg0: i32) -> (i32, i32) {
    %c0_i32 = arith.constant 0 : i32
    %c0_i32_0 = arith.constant 0 : i32
    return %arg0, %c0_i32 : i32, i32
  }
}

</mosaic_0001>

<bundles_post_ra>
// kernel: tpu_custom_call.1
= control target key start
LH: loop header
LB: loop body
LE: loop exit
PB: predicated region body
PF: predicated region fallthrough
CT: control target
= control target key end

     0   :  { %s707_s0 = inlined_call_operand.vmem [shape: f32[8,40], index: 0, kind: input, shape index: {}]   ;;  %s708_s1 = inlined_call_operand.vmem [shape: f32[40,64], index: 1, kind: input, shape index: {}]   ;;  %s709_s2 = inlined_call_operand.vmem [shape: f32[1,64], index: 2, kind: input, shape index: {}]   ;;  %s710_s3 = inlined_call_operand.vmem [shape: f32[40,64], index: 3, kind: input, shape index: {}]   ;;  %s711_s4 = inlined_call_operand.vmem [shape: f32[1,64], index: 4, kind: input, shape index: {}]   ;;  %s712_s5 = inlined_call_operand.vmem [shape: f32[64,48], index: 5, kind: input, shape index: {}]   ;;  %s713_s6 = inlined_call_operand.vmem [shape: f32[1,48], index: 6, kind: input, shape index: {}]   ;;  %s714_s7 = inlined_call_operand.vmem [shape: f32[64,48], index: 7, kind: input, shape index: {}]   ;;  %s715_s8 = inlined_call_operand.vmem [shape: f32[1,48], index: 8, kind: input, shape index: {}]   ;;  %s716_s9 = inlined_call_operand.vmem [shape: f32[48,16], index: 9, kind: input, shape index: {}]   ;;  %s717_s10 = inlined_call_operand.vmem [shape: f32[1,16], index: 10, kind: input, shape index: {}]   ;;  %s718_s11 = inlined_call_operand.vmem [shape: f32[48,16], index: 11, kind: input, shape index: {}]   ;;  %s719_s12 = inlined_call_operand.vmem [shape: f32[1,16], index: 12, kind: input, shape index: {}]   ;;  %s720_s13 = inlined_call_operand.vmem [shape: f32[8,16], index: 13, kind: input, shape index: {}]   ;;  %s721_s14 = inlined_call_operand.hbm [shape: f32[8,16], index: 14, kind: output, shape index: {0}]   ;;  %s722_s15 = inlined_call_operand.hbm [shape: f32[8,16], index: 15, kind: output, shape index: {1}]   ;;  %s723_s16 = inlined_call_operand.hbm [shape: f32[8,16], index: 16, kind: output, shape index: {2}]   ;;  %s724_s17 = inlined_call_operand.hbm [shape: f32[8,48], index: 17, kind: output, shape index: {3}]  }
   0x1   :  { %726 = sst [smem:[#allocation12_spill]] %s707_s0 }
   0x2   :  { %727 = sst [smem:[#allocation13_spill]] %s708_s1 }
   0x3   :  { %23 = vsyncpa [#allocation3], 0 }
   0x4   :  { %24 = vsyncpa [#allocation5], 0  ;;  %v92_v0 = vld [vmem:[%s710_s3 + $0x20] sm:$0xff]  ;;  %s728_s28 = sld [smem:[#allocation13_spill]]  ;;  %v91_v2 = vld [vmem:[%s710_s3 + $0x18] sm:$0xff]  ;;  %vm64_vm0 = vcmask 326656  }
   0x5   :  { %108 = vmatpush.msra.mxu1 %v92_v0  ;;  %v90_v4 = vld [vmem:[%s710_s3 + $0x10] sm:$0xff]  ;;  %v89_v6 = vld [vmem:[%s710_s3 + $0x8] sm:$0xff]  ;;  %v126_v8 = vld [vmem:[%s712_s5 + $0x38] sm:$0xff]  ;;  %s729_s22 = sld [smem:[#allocation12_spill]] }
   0x6   :  { %v88_v9 = vld [vmem:[%s710_s3] sm:$0xff]  ;;  %143 = vmatpush.msra.mxu2 %v126_v8  ;;  %v162_v10 = vld [vmem:[%s714_s7 + $0x38] sm:$0xff]  ;;  %v125_v11 = vld [vmem:[%s712_s5 + $0x30] sm:$0xff] }
   0x7   :  { %109 = vmatpush.msra.mxu1 %v91_v2  ;;  %v161_v14 = vld [vmem:[%s714_s7 + $0x30] sm:$0xff]  ;;  %v124_v15 = vld [vmem:[%s712_s5 + $0x28] sm:$0xff]  ;;  %175 = vmatpush.msra.mxu3 %v162_v10  ;;  %v123_v17 = vld [vmem:[%s712_s5 + $0x20] sm:$0xff] }
   0x8   :  { %144 = vmatpush.msra.mxu2 %v125_v11  ;;  %v160_v16 = vld [vmem:[%s714_s7 + $0x28] sm:$0xff] }
   0x9   :  { %110 = vmatpush.msra.mxu1 %v90_v4  ;;  %176 = vmatpush.msra.mxu3 %v161_v14 }
   0xa   :  { %v59_v1 = vld [vmem:[%s728_s28 + $0x20] sm:$0xff]  ;;  %v58_v3 = vld [vmem:[%s728_s28 + $0x18] sm:$0xff]  ;;  %v57_v5 = vld [vmem:[%s728_s28 + $0x10] sm:$0xff]  ;;  %145 = vmatpush.msra.mxu2 %v124_v15 }
   0xb   :  { %79 = vmatpush.msra.mxu0 %v59_v1  ;;  %v56_v7 = vld [vmem:[%s728_s28 + $0x8] sm:$0xff]  ;;  %v54_v12 = vld [vmem:[%s729_s22] sm:$0xff]  ;;  %111 = vmatpush.msra.mxu1 %v89_v6 }
   0xc   :  { %v55_v13 = vld [vmem:[%s728_s28] sm:$0xff] }
   0xd   :  { %80 = vmatpush.msra.mxu0 %v58_v3 }
   0xf   :  { %81 = vmatpush.msra.mxu0 %v57_v5 }
  0x11   :  { %82 = vmatpush.msra.mxu0 %v56_v7 }
  0x12   :  { %25 = vsyncpa [#allocation8], 0  ;;  %112 = vmatpush.msra.mxu1 %v88_v9  ;;  %v159_v18 = vld [vmem:[%s714_s7 + $0x20] sm:$0xff]  ;;  %177 = vmatpush.msra.mxu3 %v160_v16  ;;  %v122_v19 = vld [vmem:[%s712_s5 + $0x18] sm:$0xff]  ;;  %vm131_vm1 = vcmask 523264   ;;  %vm199_vm2 = vcmask 392192  }
  0x13   :  { %83 = vmatpush.msra.mxu0 %v55_v13  ;;  %337 = vmatmul.msk.f32.vlgmr.msra.gmra.mxu1 %vm64_vm0, %v54_v12  ;;  %v158_v20 = vld [vmem:[%s714_s7 + $0x18] sm:$0xff]  ;;  %v121_v21 = vld [vmem:[%s712_s5 + $0x10] sm:$0xff]  ;;  %v120_v23 = vld [vmem:[%s712_s5 + $0x8] sm:$0xff]  ;;  %s313_s29 = sshll.u32 %s724_s17, 4  ;;  %s460_s0 = smov [#allocation7]   ;;  %vm268_vm3 = vcmask 130048   ;;  %s314_s29 = int_to_ptr.hbm [resolvable:$true] %s313_s29 }
  0x14   :  { %336 = vmatmul.msk.f32.vlgmr.msra.gmra.mxu0 %vm64_vm0, %v54_v12  ;;  %146 = vmatpush.msra.mxu2 %v123_v17  ;;  %v157_v22 = vld [vmem:[%s714_s7 + $0x10] sm:$0xff]  ;;  %v156_v24 = vld [vmem:[%s714_s7 + $0x8] sm:$0xff]  ;;  %v119_v25 = vld [vmem:[%s712_s5] sm:$0xff]  ;;  %s291_s20 = sshll.u32 %s722_s15, 4  ;;  %s302_s21 = sshll.u32 %s723_s16, 4  ;;  %s292_s20 = int_to_ptr.hbm [resolvable:$true] %s291_s20  ;;  %s303_s21 = int_to_ptr.hbm [resolvable:$true] %s302_s21 }
  0x15   :  { %178 = vmatpush.msra.mxu3 %v159_v18  ;;  %v155_v26 = vld [vmem:[%s714_s7] sm:$0xff]  ;;  %v194_v27 = vld [vmem:[%s716_s9 + $0x28] sm:$0xff]  ;;  %v192_v39 = vld [vmem:[%s716_s9 + $0x18] sm:$0xff]  ;;  %s463_s24 = smov [#allocation2]   ;;  %s280_s7 = sshll.u32 %s721_s14, 4  ;;  %s281_s7 = int_to_ptr.hbm [resolvable:$true] %s280_s7 }
  0x16   :  { %147 = vmatpush.msra.mxu2 %v122_v19  ;;  %v228_v28 = vld [vmem:[%s718_s11 + $0x28] sm:$0xff]  ;;  %v193_v29 = vld [vmem:[%s716_s9 + $0x20] sm:$0xff]  ;;  %213 = vmatpush.msrb.mxu0 %v194_v27  ;;  %v226_v40 = vld [vmem:[%s718_s11 + $0x18] sm:$0xff]  ;;  %s278_s5 = sshll.u32 %s463_s24, 4  ;;  %s279_s5 = int_to_ptr.vmem [resolvable:$true] %s278_s5 }
  0x17   :  { %179 = vmatpush.msra.mxu3 %v158_v20  ;;  %243 = vmatpush.msrb.mxu1 %v228_v28  ;;  %v227_v30 = vld [vmem:[%s718_s11 + $0x20] sm:$0xff]  ;;  %v191_v41 = vld [vmem:[%s716_s9 + $0x10] sm:$0xff]  ;;  %v190_v43 = vld [vmem:[%s716_s9 + $0x8] sm:$0xff] }
  0x18   :  { %148 = vmatpush.msra.mxu2 %v121_v21  ;;  %214 = vmatpush.msrb.mxu0 %v193_v29  ;;  %v346_v31 = vld [vmem:[%s711_s4] ss:$0 sm:$0xff]  ;;  %v225_v42 = vld [vmem:[%s718_s11 + $0x10] sm:$0xff]  ;;  %v224_v44 = vld [vmem:[%s718_s11 + $0x8] sm:$0xff]  ;;  %s461_s4 = smov [#allocation4]  }
  0x19   :  { %180 = vmatpush.msra.mxu3 %v157_v22  ;;  %244 = vmatpush.msrb.mxu1 %v227_v30  ;;  %v347_v32 = vld [vmem:[%s709_s2] ss:$0 sm:$0xff]  ;;  %s289_s28 = sshll.u32 %s461_s4, 4  ;;  %s290_s28 = int_to_ptr.vmem [resolvable:$true] %s289_s28 }
  0x1a   :  { %149 = vmatpush.msra.mxu2 %v120_v23  ;;  %215 = vmatpush.msrb.mxu0 %v192_v39  ;;  %v189_v45 = vld [vmem:[%s716_s9] sm:$0xff] }
  0x1b   :  { %181 = vmatpush.msra.mxu3 %v156_v24  ;;  %245 = vmatpush.msrb.mxu1 %v226_v40  ;;  %v223_v46 = vld [vmem:[%s718_s11] sm:$0xff] }
  0x1c   :  { %150 = vmatpush.msra.mxu2 %v119_v25  ;;  %216 = vmatpush.msrb.mxu0 %v191_v41  ;;  %v349_v47 = vld [vmem:[%s715_s8] ss:$0 sm:$0xff]  ;;  %s311_s8 = sshll.u32 %s460_s0, 4  ;;  %s312_s8 = int_to_ptr.vmem [resolvable:$true] %s311_s8 }
  0x1d   :  { %182 = vmatpush.msra.mxu3 %v155_v26  ;;  %246 = vmatpush.msrb.mxu1 %v225_v42  ;;  %v348_v48 = vld [vmem:[%s713_s6] ss:$0 sm:$0xff] }
  0x1e   :  { %217 = vmatpush.msrb.mxu0 %v190_v43  ;;  %v350_v55 = vld [vmem:[%s717_s10] ss:$0 sm:$0xff]  ;;  %s462_s10 = smov [#allocation6]  }
  0x1f   :  { %247 = vmatpush.msrb.mxu1 %v224_v44  ;;  %v351_v56 = vld [vmem:[%s719_s12] ss:$0 sm:$0xff]  ;;  %s300_s12 = sshll.u32 %s462_s10, 4  ;;  %s301_s12 = int_to_ptr.vmem [resolvable:$true] %s300_s12 }
  0x20   :  { %218 = vmatpush.msrb.mxu0 %v189_v45  ;;  %v265_v8 = vld [vmem:[%s720_s13] sm:$0xff] }
  0x21   :  { %248 = vmatpush.msrb.mxu1 %v223_v46 }
  0x90   :  { %v114_v33 = vpop.f32.mrf.mxu1 }
  0x91   :  { %v85_v34 = vpop.f32.mrf.mxu0  ;;  %v115_v35 = vadd.f32 %v346_v31, %v114_v33 }
  0x92   :  { %v86_v36 = vadd.f32 %v347_v32, %v85_v34 }
  0x93   :  { %v117_v37 = vmax.f32 %v115_v35, 0.0 }
  0x95   :  { %v118_v38 = vmul.f32 %v117_v37, %v86_v36 }
  0x97   :  { %338 = vmatmul.msk.f32.vlgmr.msra.gmra.mxu2 %vm131_vm1, %v118_v38  ;;  %339 = vmatmul.msk.f32.vlgmr.msra.gmra.mxu3 %vm131_vm1, %v118_v38 }
 0x11a   :  { %v152_v49 = vpop.f32.mrf.mxu2  ;;  %v184_v50 = vpop.f32.mrf.mxu3 }
 0x11b   :  { %v185_v51 = vadd.f32 %v349_v47, %v184_v50  ;;  %v153_v52 = vadd.f32 %v348_v48, %v152_v49 }
 0x11d   :  { %v187_v53 = vmax.f32 %v185_v51, 0.0 }
 0x11f   :  { %v188_v54 = vmul.f32 %v187_v53, %v153_v52 }
 0x121   :  { %340 = vmatmul.msk.f32.vlgmr.msrb.gmra.mxu0 %vm199_vm2, %v188_v54  ;;  %272 = vst.msk [vmem:[#allocation7] sm:$0xff] %vm199_vm2, %v188_v54  ;;  %341 = vmatmul.msk.f32.vlgmr.msrb.gmra.mxu1 %vm199_vm2, %v188_v54 }
 0x122   :  { %316 = dma.vmem_to_hbm [thread:$0]  %s312_s8, 128, %s314_s29, [#allocation8]  }
 0x19e   :  { %v220_v57 = vpop.f32.mrf.mxu0  ;;  %v250_v58 = vpop.f32.mrf.mxu1 }
 0x19f   :  { %v221_v59 = vadd.f32 %v350_v55, %v220_v57  ;;  %v251_v60 = vadd.f32 %v351_v56, %v250_v58 }
 0x1a1   :  { %v253_v61 = vand.u32 2147483647, %v251_v60  ;;  %270 = vst.msk [vmem:[#allocation4] sm:$0xff] %vm268_vm3, %v221_v59  ;;  %v260_v4 = vmax.f32 %v251_v60, 0.0 }
 0x1a2   :  { %294 = dma.vmem_to_hbm [thread:$0]  %s290_s28, 128, %s292_s20, [#allocation5]  }
 0x1a3   :  { %v254_v62 = vsub.f32 0.0, %v253_v61 }
 0x1a5   :  { %v255_v63 = vmul.f32 1.442695, %v254_v62 }
 0x1a7   :  { %352 = vpow2.f32 %v255_v63 }
 0x1ad   :  { %v353_v0 = vpop.eup %352 }
 0x1ae   :  { %v257_v1 = vadd.f32 1.0, %v353_v0 }
 0x1b0   :  { %354 = vlog2.f32 %v257_v1 }
 0x1b6   :  { %v355_v2 = vpop.eup %354 }
 0x1b7   :  { %v259_v3 = vmul.f32 0.6931472, %v355_v2 }
 0x1b9   :  { %v261_v5 = vadd.f32 %v260_v4, %v259_v3 }
 0x1bb   :  { %v262_v6 = vmul.f32 0.5, %v261_v5  ;;  %271 = vst.msk [vmem:[#allocation6] sm:$0xff] %vm268_vm3, %v261_v5 }
 0x1bc   :  { %305 = dma.vmem_to_hbm [thread:$0]  %s301_s12, 128, %s303_s21, [#allocation5]  }
 0x1bd   :  { %v263_v7 = vmul.f32 1.442695, %v262_v6 }
 0x1bf   :  { %356 = vpow2.f32 %v263_v7 }
 0x1c5   :  { %v357_v9 = vpop.eup %356 }
 0x1c6   :  { %v266_v10 = vmul.f32 %v357_v9, %v265_v8 }
 0x1c8   :  { %v267_v11 = vadd.f32 %v266_v10, %v221_v59 }
 0x1ca   :  { %269 = vst.msk [vmem:[#allocation2] sm:$0xff] %vm268_vm3, %v267_v11 }
 0x1cb   :  { %283 = dma.vmem_to_hbm [thread:$0]  %s279_s5, 128, %s281_s7, [#allocation3]  }
 0x1cc   :  { %454 = dma.done.wait [#allocation3], 128  }
 0x1cd   :  { %455 = vsyncadd [#allocation3], 4294967168 }
 0x1ce   :  { %456 = dma.done.wait [#allocation5], 256  }
 0x1cf   :  { %457 = vsyncadd [#allocation5], 4294967040 }
 0x1d0   :  { %458 = dma.done.wait [#allocation8], 128  }
 0x1d1   :  { %459 = vsyncadd [#allocation8], 4294967168 }
 0x1d2   :  { %333 = vsyncpa [#allocation3], 1 }
 0x1d3   :  { %334 = vsyncpa [#allocation5], 1 }
 0x1d4   :  { %335 = vsyncpa [#allocation8], 1 }

</bundles_post_ra>
